<compile_context>
chip_gen: v7x
topology: tpu7x:2x2x1
jax: 0.10.0
libtpu: 0.0.40
codegen_flags: <defaults>
</compile_context>

<pallas_src>
import functools

import jax
import jax.numpy as jnp
from jax.experimental import pallas as pl
from jax.experimental.pallas import tpu as pltpu


_MAX_FOLD_TILES = 256  # cap on statically-unrolled 128-lane fold tiles per grid step


def dyrelu_coefs_kernel(x_ref, w1t_ref, b1_ref, w2t_ref, b2_ref, out_ref,
                        acc_ref, *, inv_hw):
    # x_ref:   (n_t, C, hw_chunk)  native dtype (cast in-kernel)
    # w1t_ref: (C, hidden)   b1_ref: (1, hidden)
    # w2t_ref: (hidden, 2k)  b2_ref: (1, 2k)
    # out_ref: (n_t, 2k)     acc_ref: (n_t, C, acc_lanes) f32 scratch
    hw_step = pl.program_id(1)

    @pl.when(hw_step == 0)
    def _init():
        acc_ref[...] = jnp.zeros_like(acc_ref)

    acc_lanes = acc_ref.shape[-1]
    hw_chunk = x_ref.shape[-1]
    num_fold = hw_chunk // acc_lanes

    # Fold the chunk into 128-lane partial sums, reading one (n_t, C, acc_lanes)
    # lane-tile from the ref per iteration (static, lane-tile-aligned slices ->
    # pure vld + VPU vreg adds, bounded live set, no block materialization).
    partial = x_ref[:, :, 0:acc_lanes].astype(jnp.float32)
    for i in range(1, num_fold):
        tile = x_ref[:, :, i * acc_lanes:(i + 1) * acc_lanes].astype(jnp.float32)
        partial = partial + tile
    acc_ref[...] += partial

    @pl.when(hw_step == pl.num_programs(1) - 1)
    def _finalize():
        # Single cross-lane (XLU) reduce; apply 1/(H*W) exactly once.
        theta = jnp.sum(acc_ref[...], axis=-1) * inv_hw               # (n_t, C)
        h = jnp.dot(theta, w1t_ref[...],
                    preferred_element_type=jnp.float32) + b1_ref[...]
        h = jnp.maximum(h, 0.0)                                       # ReLU
        o = jnp.dot(h, w2t_ref[...],
                    preferred_element_type=jnp.float32) + b2_ref[...]
        out_ref[...] = jnp.tanh(0.5 * o)                              # == 2*sigmoid(o)-1


def _tpu_vmem_capacity_bytes():
    try:
        return int(pltpu.get_tpu_info().vmem_capacity_bytes)
    except Exception:
        return 64 << 20  # conservative (v7x-sized) fallback


def _pick_n_t(n, c, hw, itemsize, budget_bytes):
    """Batch tile keeping (8, *) output alignment; prefers >=2 parallel tiles."""
    if n % 8 != 0:
        return n                       # single full-batch tile (block == full array)
    for m in (32, 16, 8):              # biggest tile that still leaves >=2 grid tiles
        if n % m == 0 and n // m >= 2 and m * c * hw * itemsize <= budget_bytes:
            return m
    return 8


def _pick_hw_chunk(hw, n_t, c, itemsize, budget_bytes):
    """Prefer a full-HW contiguous block; otherwise the largest 128-multiple
    divisor of HW within the VMEM budget and the static-unroll cap."""
    if hw % 128 != 0:
        # TODO(synk): tail masking needed to tile non-128-multiple H*W; use a
        # single full-spatial block (fine for typical sizes).
        return hw
    tile_bytes = max(1, n_t * c * 128 * itemsize)       # bytes per 128-lane fold tile
    max_tiles = max(1, min(_MAX_FOLD_TILES, budget_bytes // tile_bytes))
    total_tiles = hw // 128
    if total_tiles <= max_tiles:
        return hw                                        # one contiguous HBM transfer
    best = 128
    for t in range(1, max_tiles + 1):
        lanes = t * 128
        if hw % lanes == 0:
            best = lanes
    return best


def dyrelu_get_relu_coefs(x, w1, b1, w2, b2, *, hw_chunk_budget_bytes=None):
    """x: (N, C, H, W) float. w1:(C//r, C), b1:(C//r,), w2:(2k, C//r), b2:(2k,)."""
    N, C, H, W = x.shape
    HW = H * W
    hidden = w1.shape[0]
    out_dim = w2.shape[0]
    itemsize = jnp.dtype(x.dtype).itemsize

    # Generation-aware sizing: v7x has 64 MiB VMEM/TC, v5e/v6e have 128 MiB.
    vmem_cap = _tpu_vmem_capacity_bytes()
    if vmem_cap <= (64 << 20):
        default_budget, base_vmem_limit = 12 << 20, 48 << 20
    else:
        default_budget, base_vmem_limit = 24 << 20, 64 << 20
    budget = default_budget if hw_chunk_budget_bytes is None else hw_chunk_budget_bytes

    x_flat = x.reshape(N, C, HW)                        # native dtype, no wrapper cast
    w1t = jnp.asarray(w1, jnp.float32).T                # (C, hidden)
    w2t = jnp.asarray(w2, jnp.float32).T                # (hidden, 2k)
    b1_2d = jnp.asarray(b1, jnp.float32).reshape(1, hidden)
    b2_2d = jnp.asarray(b2, jnp.float32).reshape(1, out_dim)

    n_t = _pick_n_t(N, C, HW, itemsize, budget)
    n_tiles = N // n_t
    hw_chunk = _pick_hw_chunk(HW, n_t, C, itemsize, budget)
    hw_tiles = HW // hw_chunk
    acc_lanes = 128 if hw_chunk % 128 == 0 else hw_chunk

    block_bytes = n_t * C * hw_chunk * itemsize
    vmem_limit = min(vmem_cap, max(base_vmem_limit, 2 * block_bytes + (8 << 20)))

    kernel = functools.partial(dyrelu_coefs_kernel, inv_hw=1.0 / float(HW))

    flops = N * C * HW + 2 * N * C * hidden + 2 * N * hidden * out_dim
    bytes_accessed = (x_flat.size * itemsize
                      + 4 * (w1t.size + w2t.size + b1_2d.size + b2_2d.size)
                      + 4 * N * out_dim)

    return pl.pallas_call(
        kernel,
        out_shape=jax.ShapeDtypeStruct((N, out_dim), jnp.float32),
        grid_spec=pltpu.PrefetchScalarGridSpec(
            num_scalar_prefetch=0,
            grid=(n_tiles, hw_tiles),                   # reduction axis last
            in_specs=[
                pl.BlockSpec((n_t, C, hw_chunk), lambda n, h: (n, 0, h)),
                pl.BlockSpec((C, hidden), lambda n, h: (0, 0)),
                pl.BlockSpec((1, hidden), lambda n, h: (0, 0)),
                pl.BlockSpec((hidden, out_dim), lambda n, h: (0, 0)),
                pl.BlockSpec((1, out_dim), lambda n, h: (0, 0)),
            ],
            out_specs=pl.BlockSpec((n_t, out_dim), lambda n, h: (n, 0)),
            scratch_shapes=[pltpu.VMEM((n_t, C, acc_lanes), jnp.float32)],
        ),
        compiler_params=pltpu.CompilerParams(
            dimension_semantics=("parallel", "arbitrary"),
            vmem_limit_bytes=vmem_limit,
        ),
        cost_estimate=pl.CostEstimate(
            flops=flops,
            transcendentals=N * out_dim,
            bytes_accessed=bytes_accessed,
        ),
    )(x_flat, w1t, b1_2d, w2t, b2_2d)


def dyrelu_get_relu_coefs_ref(x, w1, b1, w2, b2):
    x = x.astype(jnp.float32)
    theta = jnp.mean(x, axis=-1)
    theta = jnp.mean(theta, axis=-1)
    theta = theta @ w1.T + b1
    theta = jnp.maximum(theta, 0.0)
    theta = theta @ w2.T + b2
    return 2.0 * jax.nn.sigmoid(theta) - 1.0


if __name__ == "__main__":
    # Module config: channels=16, reduction=4, k=2, conv_type='2d'
    channels, reduction, k = 16, 4, 2
    hidden = channels // reduction          # 4
    out_dim = 2 * k                         # 4

    key = jax.random.PRNGKey(0)
    kx, kx2, kx3, kw1, kb1, kw2, kb2 = jax.random.split(key, 7)

    # Deterministic synthetic parameters (shapes from nn.Linear in __init__).
    w1 = jax.random.normal(kw1, (hidden, channels), jnp.float32) * 0.1
    b1 = jax.random.normal(kb1, (hidden,), jnp.float32) * 0.1
    w2 = jax.random.normal(kw2, (out_dim, hidden), jnp.float32) * 0.1
    b2 = jax.random.normal(kb2, (out_dim,), jnp.float32) * 0.1

    # Buffers (unused by get_relu_coefs but part of the module state).
    lambdas = jnp.array([1.0] * k + [0.5] * k, jnp.float32)
    init_v = jnp.array([1.0] + [0.0] * (2 * k - 1), jnp.float32)

    # 1) Small NCHW input, auto budget -> single full-HW contiguous block.
    x = jax.random.normal(kx, (2, channels, 16, 16), jnp.float32)
    ref = dyrelu_get_relu_coefs_ref(x, w1, b1, w2, b2)
    out = jax.block_until_ready(dyrelu_get_relu_coefs(x, w1, b1, w2, b2))
    assert out.shape == (2, out_dim)
    assert jnp.allclose(out, ref, atol=1e-5, rtol=1e-5), (out, ref)

    # 2) Tiny budget: forces HW chunking -> exercises init/accumulate/finalize.
    out = jax.block_until_ready(
        dyrelu_get_relu_coefs(x, w1, b1, w2, b2, hw_chunk_budget_bytes=16 * 1024))
    assert jnp.allclose(out, ref, atol=1e-5, rtol=1e-5), (out, ref)

    # 3) bf16 activations (DMA'd as bf16, cast to f32 in-kernel), forced chunking.
    x_bf16 = x.astype(jnp.bfloat16)
    ref_bf = dyrelu_get_relu_coefs_ref(x_bf16, w1, b1, w2, b2)
    out = jax.block_until_ready(
        dyrelu_get_relu_coefs(x_bf16, w1, b1, w2, b2, hw_chunk_budget_bytes=8 * 1024))
    assert jnp.allclose(out, ref_bf, atol=1e-3, rtol=1e-3), (out, ref_bf)

    # 4) Larger spatial: full-HW block with a longer static fold (32 lane-tiles),
    #    plus a chunked run exercising multi-fold + multi-step together.
    x64 = jax.random.normal(kx2, (2, channels, 64, 64), jnp.float32)
    ref64 = dyrelu_get_relu_coefs_ref(x64, w1, b1, w2, b2)
    out = jax.block_until_ready(dyrelu_get_relu_coefs(x64, w1, b1, w2, b2))
    assert jnp.allclose(out, ref64, atol=1e-4, rtol=1e-4), (out, ref64)
    out = jax.block_until_ready(
        dyrelu_get_relu_coefs(x64, w1, b1, w2, b2, hw_chunk_budget_bytes=256 * 1024))
    assert jnp.allclose(out, ref64, atol=1e-4, rtol=1e-4), (out, ref64)

    # 5) Batch 16: exercises n_t=8 batch tiling (2 parallel tiles -> both v7x TCs).
    x16 = jax.random.normal(kx3, (16, channels, 16, 16), jnp.float32)
    ref16 = dyrelu_get_relu_coefs_ref(x16, w1, b1, w2, b2)
    out = jax.block_until_ready(dyrelu_get_relu_coefs(x16, w1, b1, w2, b2))
    assert out.shape == (16, out_dim)
    assert jnp.allclose(out, ref16, atol=1e-5, rtol=1e-5), (out, ref16)

    print("KERNEL_OK")
</pallas_src>

<mosaic_0001>
module attributes {stable_mosaic.version = 11 : i64} {
  func.func @dyrelu_coefs_kernel(%arg0: i32, %arg1: i32, %arg2: memref<2x16x256xf32, #tpu.memory_space<vmem>>, %arg3: memref<16x4xf32, #tpu.memory_space<vmem>>, %arg4: memref<1x4xf32, #tpu.memory_space<vmem>>, %arg5: memref<4x4xf32, #tpu.memory_space<vmem>>, %arg6: memref<1x4xf32, #tpu.memory_space<vmem>>, %arg7: memref<2x4xf32, #tpu.memory_space<vmem>>, %arg8: memref<2x16x128xf32, #tpu.memory_space<vmem>>) attributes {dimension_semantics = [#tpu.dimension_semantics<parallel>, #tpu.dimension_semantics<arbitrary>], iteration_bounds = array<i64: 1, 1>, scalar_prefetch = 0 : i64, scratch_operands = 1 : i64, tpu.core_type = #tpu.core_type<tc>, window_params = [{transform_indices = @transform_0, window_bounds = array<i64: 2, 16, 256>}, {pipeline_mode = #tpu.pipeline_mode<synchronous>, transform_indices = @transform_1, window_bounds = array<i64: 16, 4>}, {pipeline_mode = #tpu.pipeline_mode<synchronous>, transform_indices = @transform_2, window_bounds = array<i64: 1, 4>}, {pipeline_mode = #tpu.pipeline_mode<synchronous>, transform_indices = @transform_3, window_bounds = array<i64: 4, 4>}, {pipeline_mode = #tpu.pipeline_mode<synchronous>, transform_indices = @transform_4, window_bounds = array<i64: 1, 4>}, {transform_indices = @transform_5, window_bounds = array<i64: 2, 4>}]} {
    %c0_i32 = arith.constant 0 : i32
    %0 = arith.cmpi eq, %arg1, %c0_i32 : i32
    %1 = arith.extui %0 : i1 to i32
    %c0_i32_0 = arith.constant 0 : i32
    %2 = arith.cmpi ne, %1, %c0_i32_0 : i32
    scf.if %2 {
      %cst = arith.constant 0.000000e+00 : f32
      %12 = vector.broadcast %cst : f32 to vector<2x16x128xf32>
      %c0_13 = arith.constant 0 : index
      %c0_14 = arith.constant 0 : index
      %c0_15 = arith.constant 0 : index
      %13 = vector.load %arg8[%c0_13, %c0_14, %c0_15] : memref<2x16x128xf32, #tpu.memory_space<vmem>>, vector<2x16x128xf32>
      tpu.vector_store %arg8[%c0_13, %c0_14, %c0_15], %12 {strides = array<i32>} : memref<2x16x128xf32, #tpu.memory_space<vmem>>, vector<2x16x128xf32>,
    } else {
    }
    %c0 = arith.constant 0 : index
    %c0_1 = arith.constant 0 : index
    %c0_2 = arith.constant 0 : index
    %3 = vector.load %arg2[%c0, %c0_1, %c0_2] : memref<2x16x256xf32, #tpu.memory_space<vmem>>, vector<2x16x128xf32>
    %c0_3 = arith.constant 0 : index
    %c0_4 = arith.constant 0 : index
    %c128 = arith.constant 128 : index
    %4 = vector.load %arg2[%c0_3, %c0_4, %c128] : memref<2x16x256xf32, #tpu.memory_space<vmem>>, vector<2x16x128xf32>
    %5 = arith.addf %3, %4 : vector<2x16x128xf32>
    %c0_5 = arith.constant 0 : index
    %c0_6 = arith.constant 0 : index
    %c0_7 = arith.constant 0 : index
    %6 = vector.load %arg8[%c0_5, %c0_6, %c0_7] : memref<2x16x128xf32, #tpu.memory_space<vmem>>, vector<2x16x128xf32>
    %7 = arith.addf %6, %5 : vector<2x16x128xf32>
    %c0_8 = arith.constant 0 : index
    %c0_9 = arith.constant 0 : index
    %c0_10 = arith.constant 0 : index
    %8 = vector.load %arg8[%c0_8, %c0_9, %c0_10] : memref<2x16x128xf32, #tpu.memory_space<vmem>>, vector<2x16x128xf32>
    tpu.vector_store %arg8[%c0_8, %c0_9, %c0_10], %7 {strides = array<i32>} : memref<2x16x128xf32, #tpu.memory_space<vmem>>, vector<2x16x128xf32>,
    %c0_i32_11 = arith.constant 0 : i32
    %9 = arith.cmpi eq, %arg1, %c0_i32_11 : i32
    %10 = arith.extui %9 : i1 to i32
    %c0_i32_12 = arith.constant 0 : i32
    %11 = arith.cmpi ne, %10, %c0_i32_12 : i32
    scf.if %11 {
      %c0_13 = arith.constant 0 : index
      %c0_14 = arith.constant 0 : index
      %c0_15 = arith.constant 0 : index
      %12 = vector.load %arg8[%c0_13, %c0_14, %c0_15] : memref<2x16x128xf32, #tpu.memory_space<vmem>>, vector<2x16x128xf32>
      %cst = arith.constant dense<0.000000e+00> : vector<2x16xf32>
      %13 = vector.multi_reduction <add>, %12, %cst [2] : vector<2x16x128xf32> to vector<2x16xf32>
      %cst_16 = arith.constant 3.906250e-03 : f32
      %14 = vector.broadcast %cst_16 : f32 to vector<2x16xf32>
      %15 = arith.mulf %13, %14 : vector<2x16xf32>
      %c0_17 = arith.constant 0 : index
      %c0_18 = arith.constant 0 : index
      %16 = vector.load %arg3[%c0_17, %c0_18] : memref<16x4xf32, #tpu.memory_space<vmem>>, vector<16x4xf32>
      %cst_19 = arith.constant dense<0.000000e+00> : vector<2x4xf32>
      %17 = tpu.matmul %15, %16, %cst_19 {dimension_numbers = #tpu.dot_dimension_numbers<[1], [0], [0], [1], [0, 0, 1, 1], [], []>} : vector<2x16xf32>, vector<16x4xf32>, vector<2x4xf32> -> vector<2x4xf32>
      %c0_20 = arith.constant 0 : index
      %c0_21 = arith.constant 0 : index
      %18 = vector.load %arg4[%c0_20, %c0_21] : memref<1x4xf32, #tpu.memory_space<vmem>>, vector<1x4xf32>
      %19 = vector.broadcast %18 : vector<1x4xf32> to vector<2x4xf32>
      %20 = arith.addf %17, %19 : vector<2x4xf32>
      %cst_22 = arith.constant 0.000000e+00 : f32
      %21 = vector.broadcast %cst_22 : f32 to vector<2x4xf32>
      %22 = arith.maximumf %20, %21 : vector<2x4xf32>
      %c0_23 = arith.constant 0 : index
      %c0_24 = arith.constant 0 : index
      %23 = vector.load %arg5[%c0_23, %c0_24] : memref<4x4xf32, #tpu.memory_space<vmem>>, vector<4x4xf32>
      %cst_25 = arith.constant dense<0.000000e+00> : vector<2x4xf32>
      %24 = tpu.matmul %22, %23, %cst_25 {dimension_numbers = #tpu.dot_dimension_numbers<[1], [0], [0], [1], [0, 0, 1, 1], [], []>} : vector<2x4xf32>, vector<4x4xf32>, vector<2x4xf32> -> vector<2x4xf32>
      %c0_26 = arith.constant 0 : index
      %c0_27 = arith.constant 0 : index
      %25 = vector.load %arg6[%c0_26, %c0_27] : memref<1x4xf32, #tpu.memory_space<vmem>>, vector<1x4xf32>
      %26 = vector.broadcast %25 : vector<1x4xf32> to vector<2x4xf32>
      %27 = arith.addf %24, %26 : vector<2x4xf32>
      %cst_28 = arith.constant 5.000000e-01 : f32
      %28 = vector.broadcast %cst_28 : f32 to vector<2x4xf32>
      %29 = arith.mulf %28, %27 : vector<2x4xf32>
      %30 = math.tanh %29 : vector<2x4xf32>
      %c0_29 = arith.constant 0 : index
      %c0_30 = arith.constant 0 : index
      %31 = vector.load %arg7[%c0_29, %c0_30] : memref<2x4xf32, #tpu.memory_space<vmem>>, vector<2x4xf32>
      tpu.vector_store %arg7[%c0_29, %c0_30], %30 {strides = array<i32>} : memref<2x4xf32, #tpu.memory_space<vmem>>, vector<2x4xf32>,
    } else {
    }
    return
  }
  func.func @transform_0(%arg0: i32, %arg1: i32) -> (i32, i32, i32) {
    %c0_i32 = arith.constant 0 : i32
    %c0_i32_0 = arith.constant 0 : i32
    return %arg0, %c0_i32, %arg1 : i32, i32, i32
  }
  func.func @transform_1(%arg0: i32, %arg1: i32) -> (i32, i32) {
    %c0_i32 = arith.constant 0 : i32
    %c0_i32_0 = arith.constant 0 : i32
    %c0_i32_1 = arith.constant 0 : i32
    return %c0_i32, %c0_i32_0 : i32, i32
  }
  func.func @transform_2(%arg0: i32, %arg1: i32) -> (i32, i32) {
    %c0_i32 = arith.constant 0 : i32
    %c0_i32_0 = arith.constant 0 : i32
    %c0_i32_1 = arith.constant 0 : i32
    return %c0_i32, %c0_i32_0 : i32, i32
  }
  func.func @transform_3(%arg0: i32, %arg1: i32) -> (i32, i32) {
    %c0_i32 = arith.constant 0 : i32
    %c0_i32_0 = arith.constant 0 : i32
    %c0_i32_1 = arith.constant 0 : i32
    return %c0_i32, %c0_i32_0 : i32, i32
  }
  func.func @transform_4(%arg0: i32, %arg1: i32) -> (i32, i32) {
    %c0_i32 = arith.constant 0 : i32
    %c0_i32_0 = arith.constant 0 : i32
    %c0_i32_1 = arith.constant 0 : i32
    return %c0_i32, %c0_i32_0 : i32, i32
  }
  func.func @transform_5(%arg0: i32, %arg1: i32) -> (i32, i32) {
    %c0_i32 = arith.constant 0 : i32
    %c0_i32_0 = arith.constant 0 : i32
    return %arg0, %c0_i32 : i32, i32
  }
}

</mosaic_0001>

<bundles_post_ra>
// kernel: tpu_custom_call.1
= control target key start
LH: loop header
LB: loop body
LE: loop exit
PB: predicated region body
PF: predicated region fallthrough
CT: control target
= control target key end

     0   :  { %10 = vsyncpa [#allocation4], 0  ;;  %s460_s0 = inlined_call_operand.hbm [shape: f32[2,16,256], index: 0, kind: input, shape index: {}]   ;;  %s461_s1 = inlined_call_operand.vmem [shape: f32[16,4], index: 1, kind: input, shape index: {}]   ;;  %s462_s2 = inlined_call_operand.vmem [shape: f32[1,4], index: 2, kind: input, shape index: {}]   ;;  %s463_s3 = inlined_call_operand.vmem [shape: f32[4,4], index: 3, kind: input, shape index: {}]   ;;  %s464_s4 = inlined_call_operand.vmem [shape: f32[1,4], index: 4, kind: input, shape index: {}]   ;;  %s465_s5 = inlined_call_operand.hbm [shape: f32[2,4], index: 5, kind: output, shape index: {}]  }
   0x1   :  { %11 = vsyncpa [#allocation5], 0  ;;  %s384_s18 = smov [#allocation3]   ;;  %s336_s22 = scalar_lea.hbm %s460_s0, 1024 }
   0x2   :  { %s17_s19 = sshll.u32 %s384_s18, 4  ;;  %p337_p0 = scmp.ne.s32.totalorder %s460_s0, %s336_s22  ;;  %s18_s19 = int_to_ptr.vmem [resolvable:$true] %s17_s19 }
   0x3   :  { %p340_p1 = scmp.lt.u32.totalorder %s336_s22, %s460_s0 }
   0x5   :  { %p342_p2 = pnand %p340_p1, %p337_p0 }
   0x7   :  { %345 = shalt.err (!%p342_p2)
}
   0x8   :  { %s346_s27 = scalar_lea.vmem %s18_s19, 1024  ;;  %p351_p4 = scmp.lt.s32.totalorder %s18_s19, %s18_s19 }
   0x9   :  { %p347_p3 = scmp.ne.s32.totalorder %s18_s19, %s346_s27  ;;  %p352_p5 = scmp.lt.s32.totalorder %s346_s27, %s346_s27 }
   0xb   :  { %p353_p6 = por %p352_p5, %p351_p4 }
   0xd   :  { %p354_p7 = pnand %p353_p6, %p347_p3 }
   0xf   :  { %357 = shalt.err (!%p354_p7)
}
  0x10   :  { %s385_s28 = smov 256   ;;  %s386_s29 = smov 16  }
  0x11   :  { %23 = dma.hbm_to_vmem [thread:$0]  %s460_s0, 1024, %s18_s19, [#allocation4], %s385_s28, %s385_s28, %s386_s29  }
  0x12   :  { %380 = dma.done.wait [#allocation4], 1024  }
  0x13   :  { %381 = vsyncadd [#allocation4], 4294966272  ;;  %v45_v0 = vld [vmem:[#allocation3 + $0x20] sm:$0xff]  ;;  %v49_v1 = vld [vmem:[#allocation3 + $0x28] sm:$0xff]  ;;  %v387_v15 = vmov 0.0|0.0   ;;  %vm388_vm0 = vmmov 0   ;;  %v99_v17 = vlaneseq }
  0x14   :  { %v43_v2 = vld [vmem:[#allocation3] sm:$0xff]  ;;  %v53_v3 = vadd.f32 %v49_v1, %v45_v0  ;;  %v47_v4 = vld [vmem:[#allocation3 + $0x8] sm:$0xff]  ;;  %v46_v5 = vld [vmem:[#allocation3 + $0x30] sm:$0xff]  ;;  %324 = vmatprep.subr.bf16.mxu0 %v387_v15  ;;  %v389_v16 = vmov 0.0   ;;  %vm110_vm1 = vcmask 130112   ;;  %vm121_vm2 = vcmask 1041409  }
  0x15   :  { %v50_v6 = vld [vmem:[#allocation3 + $0x38] sm:$0xff]  ;;  %v51_v7 = vadd.f32 %v47_v4, %v43_v2  ;;  %v44_v8 = vld [vmem:[#allocation3 + $0x10] sm:$0xff]  ;;  %v86_v12 = vld [vmem:[%s461_s1] sm:$0xff]  ;;  %316 = vmatprep.mubr.msk.f32.mxu0 %vm388_vm0, %v389_v16  ;;  %319 = vmatprep.subr.mxu1 %v389_v16  ;;  %v100_v18 = vand.u32 127, %v99_v17  ;;  %v102_v19 = vshrl.u32 %v99_v17, 7  ;;  %vm123_vm3 = vcmask 130048  }
  0x16   :  { %v48_v9 = vld [vmem:[#allocation3 + $0x18] sm:$0xff]  ;;  %78 = vadd.xlane.f32.xlu1 %v53_v3  ;;  %v54_v10 = vadd.f32 %v50_v6, %v46_v5  ;;  %v87_v13 = vld [vmem:[%s461_s1 + $0x8] sm:$0xff]  ;;  %321 = vmatprep.mubr.msk.f32.mxu1 %vm388_vm0, %v389_v16  ;;  %v197_v38 = vld [vmem:[%s463_s3] sm:$0xf]  ;;  %vm209_vm4 = vcmask 1043456   ;;  %vm205_vm5 = vcmask 31744  }
  0x17   :  { %74 = vadd.xlane.f32.xlu0 %v51_v7  ;;  %v52_v11 = vadd.f32 %v48_v9, %v44_v8  ;;  %v325_v14 = vpack.c.bf16 %v87_v13, %v86_v12  ;;  %v105_v20 = vadd.s32 4294967288, %v100_v18  ;;  %v103_v23 = vsub.s32 %v100_v18, %v102_v19  ;;  %320 = vmatpush3.msk.msra.mxu1 %vm209_vm4, %v197_v38  ;;  %v302_v39 = vld [vmem:[%s462_s2] ss:$0 sm:$0xff]  ;;  %s390_s3 = smov [#allocation6]  }
  0x18   :  { %v304_v44 = vld [vmem:[%s464_s4] ss:$0 sm:$0xff]  ;;  %s293_s15 = sshll.u32 %s390_s3, 4  ;;  %vm285_vm6 = vcmask 25600   ;;  %s294_s15 = int_to_ptr.vmem [resolvable:$true] %s293_s15 }
  0x19   :  { %326 = vmatpush3.bf16.msra.mxu0 %v325_v14  ;;  %v108_v25 = vsub.s32 %v105_v20, %v102_v19  ;;  %s358_s2 = scalar_lea.vmem %s294_s15, 32  ;;  %p363_p9 = scmp.lt.s32.totalorder %s294_s15, %s294_s15 }
  0x1a   :  { %80 = vadd.xlane.f32.xlu1 %v54_v10  ;;  %p359_p8 = scmp.ne.s32.totalorder %s294_s15, %s358_s2  ;;  %p364_p10 = scmp.lt.s32.totalorder %s358_s2, %s358_s2 }
  0x1b   :  { %76 = vadd.xlane.f32.xlu0 %v52_v11 }
  0x1c   :  { %p365_p11 = por %p364_p10, %p363_p9 }
  0x1e   :  { %p366_p12 = pnand %p365_p11, %p359_p8 }
  0xa3   :  { %v79_v21 = vpop.xlane.xlu1 %78 }
  0xa4   :  { %v75_v22 = vpop.xlane.xlu0 %74  ;;  %v84_v24 = vmul.f32 0.00390625, %v79_v21 }
  0xa5   :  { %v82_v26 = vmul.f32 0.00390625, %v75_v22 }
  0xa6   :  { %v115_v31 = vrot.slane %v84_v24, %v103_v23 }
  0xa7   :  { %v81_v27 = vpop.xlane.xlu1 %80  ;;  %v104_v33 = vrot.slane %v82_v26, %v103_v23 }
  0xa8   :  { %v85_v28 = vmul.f32 0.00390625, %v81_v27  ;;  %v77_v29 = vpop.xlane.xlu0 %76 }
  0xa9   :  { %v83_v30 = vmul.f32 0.00390625, %v77_v29 }
  0xaa   :  { %v119_v32 = vrot.slane %v85_v28, %v108_v25 }
  0xab   :  { %v109_v34 = vrot.slane %v83_v30, %v108_v25 }
  0xac   :  { %v120_v35 = vsel %vm110_vm1, %v119_v32, %v115_v31 }
  0xad   :  { %v111_v36 = vsel %vm110_vm1, %v109_v34, %v104_v33 }
  0xae   :  { %v122_v37 = vsel %vm121_vm2, %v120_v35, %v111_v36 }
  0xaf   :  { %317 = vmatmul.mubr.msk.f32.vlgmr.msra.gmra.mrb[0].mxu0 %vm123_vm3, %v122_v37 }
 0x182   :  { %v192_v40 = vpop.f32.mrb[0].mxu0 }
 0x183   :  { %v193_v41 = vadd.f32 %v302_v39, %v192_v40  ;;  %v318_v42 = vpop.f32.mrb[1].mxu0 }
 0x185   :  { %v196_v43 = vmax.f32 %v193_v41, 0.0 }
 0x187   :  { %322 = vmatmul.mubr.msk.f32.vlgmr.msra.gmra.mrb[0].mxu1 %vm205_vm5, %v196_v43 }
 0x25a   :  { %v279_v45 = vpop.f32.mrb[0].mxu1 }
 0x25b   :  { %v280_v46 = vadd.f32 %v304_v44, %v279_v45  ;;  %v323_v47 = vpop.f32.mrb[1].mxu1 }
 0x25d   :  { %v283_v48 = vmul.f32 0.5, %v280_v46 }
 0x25f   :  { %334 = vtanh.f32 %v283_v48 }
 0x269   :  { %v335_v49 = vpop.eup %334 }
 0x26a   :  { %286 = vst.msk [vmem:[#allocation6] sm:$0x3] %vm285_vm6, %v335_v49 }
 0x26b   :  { %369 = shalt.err (!%p366_p12)
}
 0x26c   :  { %s370_s17 = scalar_lea.hbm %s465_s5, 32 }
 0x26d   :  { %p371_p13 = scmp.ne.s32.totalorder %s465_s5, %s370_s17  ;;  %p374_p0 = scmp.lt.u32.totalorder %s370_s17, %s465_s5 }
 0x26f   :  { %p376_p1 = pnand %p374_p0, %p371_p13 }
 0x271   :  { %379 = shalt.err (!%p376_p1)
}
 0x272   :  { %296 = dma.vmem_to_hbm [thread:$0]  %s294_s15, 32, %s465_s5, [#allocation5]  }
 0x273   :  { %382 = dma.done.wait [#allocation5], 32  }
 0x274   :  { %383 = vsyncadd [#allocation5], 4294967264 }
 0x275   :  { %300 = vsyncpa [#allocation4], 1 }
 0x276   :  { %301 = vsyncpa [#allocation5], 1 }

</bundles_post_ra>
